<compile_context>
chip_gen: v7x
topology: tpu7x:2x2x1
jax: 0.10.0
libtpu: 0.0.40
codegen_flags: <defaults>
</compile_context>

<pallas_src>
import math
from functools import partial

import jax
import jax.numpy as jnp
from jax import lax
from jax.experimental import pallas as pl
from jax.experimental.pallas import tpu as pltpu

DESC_DIM = 448
KP_ENC = [32, 64, 128, 256, 512]
GNN_LAYERS = ['self', 'cross'] * 9
SINKHORN_ITERS = 100
NUM_HEADS = 4
HEAD_DIM = DESC_DIM // NUM_HEADS      # 112
HEAD_DIM_PAD = 128                    # lane-dense head dim inside the attention kernel
_ATTN_SCALE = 1.0 / math.sqrt(HEAD_DIM)

_VMEM_LIMIT = 48 * 1024 * 1024        # fits v7x (64 MiB physical) with headroom; fine on v5e/v6e

# Matmul tiling. Output tiles are 256 (or 128 when that avoids N/M padding) wide to fill the
# 256-wide MXU on v6e/v7x. K is done in a single un-padded step when it fits (every K in this
# model is <= 4608: 3x3x512 convs); otherwise it is tiled in 512-deep chunks. Worst-case
# double-buffered bf16 working set < 11 MiB.
_TK_SINGLE = 4608
_TK = 512


def _rup(x, m):
    return ((x + m - 1) // m) * m


# ----------------------------------------------------------------------------
# Tiled matmul kernel with fused bias / ReLU / residual epilogue
# ----------------------------------------------------------------------------

def _mm_kernel(*refs, relu, has_residual):
    if has_residual:
        a_ref, b_ref, bias_ref, res_ref, o_ref, acc_ref = refs
    else:
        a_ref, b_ref, bias_ref, o_ref, acc_ref = refs
        res_ref = None

    @pl.when(pl.program_id(2) == 0)
    def _():
        acc_ref[...] = jnp.zeros_like(acc_ref)

    acc_ref[...] += jnp.dot(a_ref[...], b_ref[...],
                            preferred_element_type=jnp.float32)

    @pl.when(pl.program_id(2) == pl.num_programs(2) - 1)
    def _():
        out = acc_ref[...] + bias_ref[...]
        if has_residual:
            out = out + res_ref[...]
        if relu:
            out = jnp.maximum(out, 0.0)
        o_ref[...] = out


@partial(jax.jit, static_argnames=("relu",))
def _matmul_impl(a, b, bias, residual, *, relu):
    M, K = a.shape
    K2, N = b.shape
    assert K == K2

    # M tile: prefer 256, drop to 128 when that strictly reduces zero-padding.
    if M > 128:
        tm = 128 if ((-M) % 128) < ((-M) % 256) else 256
    else:
        tm = _rup(M, 8)
    Mp = _rup(M, tm)

    # N tile: 256 when the 128-rounded N is a 256 multiple, else 128 (no extra padding).
    Np = _rup(N, 128)
    tn = 256 if Np % 256 == 0 else 128

    Kp8 = _rup(K, 8)
    if Kp8 <= _TK_SINGLE:
        tk, Kp = Kp8, Kp8               # single K step, minimal padding
    else:
        tk, Kp = _TK, _rup(K, _TK)      # tiled K (512-deep, 128-aligned)

    ap = jnp.pad(a.astype(jnp.bfloat16), ((0, Mp - M), (0, Kp - K)))
    bp = jnp.pad(b.astype(jnp.bfloat16), ((0, Kp - K), (0, Np - N)))
    biasp = jnp.pad(bias.astype(jnp.float32), (0, Np - N)).reshape(1, Np)

    in_specs = [pl.BlockSpec((tm, tk), lambda i, j, k: (i, k)),
                pl.BlockSpec((tk, tn), lambda i, j, k: (k, j)),
                pl.BlockSpec((1, tn), lambda i, j, k: (0, j))]
    operands = [ap, bp, biasp]
    has_residual = residual is not None
    if has_residual:
        rp = jnp.pad(residual.astype(jnp.float32), ((0, Mp - M), (0, Np - N)))
        in_specs.append(pl.BlockSpec((tm, tn), lambda i, j, k: (i, j)))
        operands.append(rp)

    out = pl.pallas_call(
        partial(_mm_kernel, relu=relu, has_residual=has_residual),
        out_shape=jax.ShapeDtypeStruct((Mp, Np), jnp.float32),
        grid=(Mp // tm, Np // tn, Kp // tk),
        in_specs=in_specs,
        out_specs=pl.BlockSpec((tm, tn), lambda i, j, k: (i, j)),
        scratch_shapes=[pltpu.VMEM((tm, tn), jnp.float32)],
        compiler_params=pltpu.CompilerParams(
            dimension_semantics=("parallel", "parallel", "arbitrary"),
            vmem_limit_bytes=_VMEM_LIMIT),
    )(*operands)
    return out[:M, :N]


def pallas_matmul(a, b, bias=None, relu=False, residual=None):
    """(M, K) @ (K, N) + bias [+ residual] [-> ReLU], bf16 MXU inputs, f32 accumulation."""
    if bias is None:
        bias = jnp.zeros((b.shape[1],), jnp.float32)
    return _matmul_impl(a, b, bias, residual, relu=relu)


# ----------------------------------------------------------------------------
# Fused multi-head attention (grid over batch, all heads inside, lane-dense Dh=128)
# ----------------------------------------------------------------------------

def _attn_kernel(q_ref, k_ref, v_ref, o_ref, *, scale):
    q = q_ref[0] * scale                                             # (H, N, Dp) bf16
    k = k_ref[0]
    v = v_ref[0]
    s = jnp.einsum('hnd,hmd->hnm', q, k,
                   preferred_element_type=jnp.float32)               # (H, N, N)
    s = s - jnp.max(s, axis=-1, keepdims=True)
    p = jnp.exp(s)
    denom = jnp.sum(p, axis=-1, keepdims=True)
    p = p * pl.reciprocal(denom, approx=True)
    o_ref[0] = jnp.einsum('hnm,hmd->hnd', p.astype(v.dtype), v,
                          preferred_element_type=jnp.float32)        # (H, N, Dp)


@jax.jit
def pallas_attention(q, k, v):
    """q,k,v: (B, heads, N, HEAD_DIM_PAD) bf16 -> (B, heads, N, HEAD_DIM_PAD) f32."""
    B, Hh, N, Dp = q.shape
    spec = pl.BlockSpec((1, Hh, N, Dp), lambda b: (b, 0, 0, 0))
    return pl.pallas_call(
        partial(_attn_kernel, scale=_ATTN_SCALE),
        out_shape=jax.ShapeDtypeStruct((B, Hh, N, Dp), jnp.float32),
        grid=(B,),
        in_specs=[spec, spec, spec],
        out_specs=spec,
        compiler_params=pltpu.CompilerParams(
            dimension_semantics=("parallel",), vmem_limit_bytes=_VMEM_LIMIT),
    )(q, k, v)


# ----------------------------------------------------------------------------
# Pairwise descriptor scores (einsum 'bdn,bdm->bnm' in (B, N, C) layout, scale fused)
# ----------------------------------------------------------------------------

def _score_kernel(a_ref, b_ref, o_ref, *, scale):
    s = lax.dot_general(a_ref[0], b_ref[0],
                        dimension_numbers=(((1,), (1,)), ((), ())),
                        preferred_element_type=jnp.float32)
    o_ref[0] = s * scale


@partial(jax.jit, static_argnames=("scale",))
def pallas_pairwise_scores(d0, d1, *, scale):
    B, N, D = d0.shape
    M = d1.shape[1]
    d0b = d0.astype(jnp.bfloat16)
    d1b = d1.astype(jnp.bfloat16)
    return pl.pallas_call(
        partial(_score_kernel, scale=scale),
        out_shape=jax.ShapeDtypeStruct((B, N, M), jnp.float32),
        grid=(B,),
        in_specs=[pl.BlockSpec((1, N, D), lambda b: (b, 0, 0)),
                  pl.BlockSpec((1, M, D), lambda b: (b, 0, 0))],
        out_specs=pl.BlockSpec((1, N, M), lambda b: (b, 0, 0)),
        compiler_params=pltpu.CompilerParams(
            dimension_semantics=("parallel",), vmem_limit_bytes=_VMEM_LIMIT),
    )(d0b, d1b)


# ----------------------------------------------------------------------------
# Log-domain Sinkhorn (100 iterations inside one kernel, grid over batch, -norm fused)
# ----------------------------------------------------------------------------

def _sinkhorn_kernel(z_ref, mu_ref, nu_ref, o_ref, *, iters, shift):
    Z = z_ref[0]            # (M1, N1)
    mu = mu_ref[0]          # (M1, 1)
    nu = nu_ref[0]          # (1, N1)

    def lse(x, axis):
        mx = jnp.max(x, axis=axis, keepdims=True)
        return mx + jnp.log(jnp.sum(jnp.exp(x - mx), axis=axis, keepdims=True))

    def body(_, uv):
        u, v = uv
        u = mu - lse(Z + v, axis=1)
        v = nu - lse(Z + u, axis=0)
        return (u, v)

    u, v = lax.fori_loop(0, iters, body, (jnp.zeros_like(mu), jnp.zeros_like(nu)))
    o_ref[0] = Z + u + v + shift


@partial(jax.jit, static_argnames=("iters", "shift"))
def _sinkhorn_pallas(couplings, log_mu, log_nu, iters, shift):
    B, M1, N1 = couplings.shape
    return pl.pallas_call(
        partial(_sinkhorn_kernel, iters=iters, shift=shift),
        out_shape=jax.ShapeDtypeStruct((B, M1, N1), jnp.float32),
        grid=(B,),
        in_specs=[pl.BlockSpec((1, M1, N1), lambda b: (b, 0, 0)),
                  pl.BlockSpec((1, M1, 1), lambda b: (b, 0, 0)),
                  pl.BlockSpec((1, 1, N1), lambda b: (b, 0, 0))],
        out_specs=pl.BlockSpec((1, M1, N1), lambda b: (b, 0, 0)),
        compiler_params=pltpu.CompilerParams(
            dimension_semantics=("parallel",), vmem_limit_bytes=_VMEM_LIMIT),
    )(couplings, log_mu, log_nu)


# ----------------------------------------------------------------------------
# Conv / pooling / resize glue (all FLOPs go through pallas_matmul)
# ----------------------------------------------------------------------------

def conv2d(x_nhwc, w, b, stride=1, pad=0, relu=False, residual=None):
    """w is pre-laid-out (kh, kw, Cin, Cout) bf16; bias/ReLU/residual fused in the matmul."""
    B, H, W, C = x_nhwc.shape
    kh, kw, I, O = w.shape
    if kh == 1 and kw == 1 and stride == 1 and pad == 0:
        res2 = None if residual is None else residual.reshape(B * H * W, O)
        y = pallas_matmul(x_nhwc.reshape(B * H * W, C), w.reshape(C, O), b,
                          relu=relu, residual=res2)
        return y.reshape(B, H, W, O)
    xp = jnp.pad(x_nhwc, ((0, 0), (pad, pad), (pad, pad), (0, 0)))
    OH = (H + 2 * pad - kh) // stride + 1
    OW = (W + 2 * pad - kw) // stride + 1
    cols = []
    for i in range(kh):
        for j in range(kw):
            cols.append(xp[:, i:i + stride * OH:stride, j:j + stride * OW:stride, :])
    patches = jnp.concatenate(cols, axis=-1).reshape(B * OH * OW, kh * kw * C)
    res2 = None if residual is None else residual.reshape(B * OH * OW, O)
    y = pallas_matmul(patches, w.reshape(kh * kw * I, O), b, relu=relu, residual=res2)
    return y.reshape(B, OH, OW, O)


def conv1d(x_bnc, w, b, relu=False):
    """1x1 Conv1d in (B, N, C) layout: a plain (B*N, C) @ (C, O) matmul, no transposes."""
    B, N, C = x_bnc.shape
    O = w.shape[1]
    y = pallas_matmul(x_bnc.reshape(B * N, C), w, b, relu=relu)
    return y.reshape(B, N, O)


def maxpool3x3s2(x):
    return lax.reduce_window(x, -jnp.inf, lax.max, (1, 3, 3, 1), (1, 2, 2, 1),
                             padding=((0, 0), (1, 1), (1, 1), (0, 0)))


def upsample_bilinear_align_corners(x, oh, ow):
    B, H, W, C = x.shape
    ry = jnp.zeros((oh,), jnp.float32) if H == 1 else (
        jnp.arange(oh, dtype=jnp.float32) * (H - 1) / (oh - 1))
    rx = jnp.zeros((ow,), jnp.float32) if W == 1 else (
        jnp.arange(ow, dtype=jnp.float32) * (W - 1) / (ow - 1))
    y0 = jnp.floor(ry).astype(jnp.int32)
    y1 = jnp.minimum(y0 + 1, H - 1)
    wy = (ry - y0)[None, :, None, None]
    x0 = jnp.floor(rx).astype(jnp.int32)
    x1 = jnp.minimum(x0 + 1, W - 1)
    wx = (rx - x0)[None, None, :, None]
    g = lambda yi, xi: x[:, yi][:, :, xi]
    top = g(y0, x0) * (1 - wx) + g(y0, x1) * wx
    bot = g(y1, x0) * (1 - wx) + g(y1, x1) * wx
    return top * (1 - wy) + bot * wy


# ----------------------------------------------------------------------------
# Parameter init (deterministic, synthetic) — weights are stored pre-transposed/pre-cast
# in the layout the kernels consume ((kh,kw,Cin,Cout) / (Cin,Cout), bf16); GNN q/k/v
# projections are additionally stored pre-fused (qkv / kv) so self/cross layers issue a
# single projection matmul per branch-stack.
# ----------------------------------------------------------------------------

def _conv_w(key, o, i, kh, kw):
    w = jax.random.normal(key, (kh, kw, i, o), jnp.float32) * math.sqrt(1.0 / (i * kh * kw))
    return w.astype(jnp.bfloat16)


def _lin(key, o, i):
    w = jax.random.normal(key, (i, o), jnp.float32) * math.sqrt(1.0 / i)
    return (w.astype(jnp.bfloat16), jnp.zeros((o,), jnp.float32))


def init_resnet18(key):
    keys = iter(jax.random.split(key, 64))
    p = {'conv1': _conv_w(next(keys), 64, 3, 7, 7), 'layers': []}
    plan = [(64, 64), (128, 64), (256, 128), (512, 256)]
    for li, (out_c, in_c) in enumerate(plan):
        blocks = []
        for bi in range(2):
            stride = 2 if (li > 0 and bi == 0) else 1
            ic = in_c if bi == 0 else out_c
            blk = {'conv1': _conv_w(next(keys), out_c, ic, 3, 3),
                   'conv2': _conv_w(next(keys), out_c, out_c, 3, 3)}
            if stride != 1 or ic != out_c:
                blk['down'] = _conv_w(next(keys), out_c, ic, 1, 1)
            blocks.append(blk)
        p['layers'].append(blocks)
    return p


def init_kenc(key):
    # reference kenc input here is the 2-D normalized keypoint grid -> 2 input channels
    channels = [2] + KP_ENC + [DESC_DIM]
    keys = jax.random.split(key, len(channels))
    return [_lin(keys[i], channels[i], channels[i - 1]) for i in range(1, len(channels))]


def init_gnn(key):
    layers = []
    for k in jax.random.split(key, len(GNN_LAYERS)):
        k1, k2, k3, k4, km1, km2 = jax.random.split(k, 6)
        wq, bq = _lin(k1, DESC_DIM, DESC_DIM)
        wk, bk = _lin(k2, DESC_DIM, DESC_DIM)
        wv, bv = _lin(k3, DESC_DIM, DESC_DIM)
        attn = {'q': (wq, bq),
                'kv': (jnp.concatenate([wk, wv], axis=1),
                       jnp.concatenate([bk, bv], axis=0)),
                'qkv': (jnp.concatenate([wq, wk, wv], axis=1),
                        jnp.concatenate([bq, bk, bv], axis=0)),
                'merge': _lin(k4, DESC_DIM, DESC_DIM)}
        mlp = [_lin(km1, 2 * DESC_DIM, 2 * DESC_DIM), _lin(km2, DESC_DIM, 2 * DESC_DIM)]
        layers.append({'attn': attn, 'mlp': mlp})
    return layers


def init_params(key):
    ks = jax.random.split(key, 10)
    return {
        'resnet': init_resnet18(ks[0]),
        'kenc': init_kenc(ks[1]),
        'gnn': init_gnn(ks[2]),
        'final_proj': _lin(ks[3], DESC_DIM, DESC_DIM),
        'scalex_proj': (_conv_w(ks[4], 1, DESC_DIM, 3, 3), jnp.zeros((1,), jnp.float32)),
        'compress_0': (_conv_w(ks[5], 256, 512, 1, 1), jnp.zeros((256,), jnp.float32)),
        'compress_1': (_conv_w(ks[6], 128, 512, 1, 1), jnp.zeros((128,), jnp.float32)),
        'compress_2': (_conv_w(ks[7], 64, 512, 1, 1), jnp.zeros((64,), jnp.float32)),
        'bin_score': jnp.float32(0.0),
    }


# ----------------------------------------------------------------------------
# Sub-networks
# ----------------------------------------------------------------------------

def basic_block(p, x, stride):
    out = conv2d(x, p['conv1'], None, stride=stride, pad=1, relu=True)
    if 'down' in p:
        identity = conv2d(x, p['down'], None, stride=stride, pad=0)
    else:
        identity = x
    # residual add + ReLU fused into the second conv's matmul epilogue
    return conv2d(out, p['conv2'], None, stride=1, pad=1, relu=True, residual=identity)


def resnet18_forward(p, x_nhwc):
    x = conv2d(x_nhwc, p['conv1'], None, stride=2, pad=3, relu=True)
    x = maxpool3x3s2(x)
    for li, blocks in enumerate(p['layers']):
        for bi, blk in enumerate(blocks):
            stride = 2 if (li > 0 and bi == 0) else 1
            x = basic_block(blk, x, stride)
    return x  # (B, H/32, W/32, 512)


def kenc_forward(layers, kpts):
    x = kpts  # (N, 2)
    for li, (w, b) in enumerate(layers):
        x = pallas_matmul(x, w, b, relu=(li < len(layers) - 1))
    return x  # (N, DESC_DIM)


def mha_forward(p, x, source):
    B, N, D = x.shape
    if x is source:
        # 'self' layers: one fused q|k|v projection matmul
        qkv = conv1d(x, *p['qkv'])                                    # (B, N, 3D)
        q, k, v = qkv[..., :D], qkv[..., D:2 * D], qkv[..., 2 * D:]
    else:
        # 'cross' layers: q on x, fused k|v on source
        q = conv1d(x, *p['q'])
        kv = conv1d(source, *p['kv'])                                 # (B, N, 2D)
        k, v = kv[..., :D], kv[..., D:]

    def split_heads(t):
        # matches PyTorch view(B, Dh, heads, N): channel c -> (dh, h) with dh outer
        t = t.reshape(B, N, HEAD_DIM, NUM_HEADS)
        t = jnp.transpose(t, (0, 3, 1, 2)).astype(jnp.bfloat16)       # (B, heads, N, Dh)
        return jnp.pad(t, ((0, 0), (0, 0), (0, 0), (0, HEAD_DIM_PAD - HEAD_DIM)))

    msg = pallas_attention(split_heads(q), split_heads(k), split_heads(v))
    msg = msg[..., :HEAD_DIM]                                         # (B, heads, N, Dh)
    msg = jnp.transpose(msg, (0, 2, 3, 1)).reshape(B, N, D)           # merge c = dh*heads + h
    return conv1d(msg, *p['merge'])


def attentional_propagation(p, x, source):
    message = mha_forward(p['attn'], x, source)
    y = jnp.concatenate([x, message], axis=-1)                        # (B, N, 2D)
    (w1, b1), (w2, b2) = p['mlp']
    h = conv1d(y, w1, b1, relu=True)
    return conv1d(h, w2, b2)


def gnn_forward(layers, desc0, desc1):
    """Both branches stacked on the batch axis -> one projection / attention / MLP per layer."""
    B = desc0.shape[0]
    for p, name in zip(layers, GNN_LAYERS):
        x = jnp.concatenate([desc0, desc1], axis=0)                   # (2B, N, D)
        if name == 'cross':
            source = jnp.concatenate([desc1, desc0], axis=0)
        else:
            source = x                                                # identity -> fused qkv
        delta = attentional_propagation(p, x, source)
        desc0 = desc0 + delta[:B]
        desc1 = desc1 + delta[B:]
    return desc0, desc1


def descriptor_branch(params, img, img_half, img_quarter):
    """img may carry both left and right images stacked on the batch axis."""
    d0 = resnet18_forward(params['resnet'], img)
    h, w = d0.shape[1], d0.shape[2]
    d1 = resnet18_forward(params['resnet'], img_half)
    d2 = resnet18_forward(params['resnet'], img_quarter)
    d1 = upsample_bilinear_align_corners(d1, h, w)
    d2 = upsample_bilinear_align_corners(d2, h, w)
    d0 = conv2d(d0, *params['compress_0'], stride=1, pad=0)
    d1 = conv2d(d1, *params['compress_1'], stride=1, pad=0)
    d2 = conv2d(d2, *params['compress_2'], stride=1, pad=0)
    desc = jnp.concatenate([d0, d1, d2], axis=-1)                     # (B, h, w, 448)
    B = desc.shape[0]
    cols = jnp.repeat(jnp.arange(h, dtype=jnp.float32), w) / float(h)
    rows = jnp.tile(jnp.arange(w, dtype=jnp.float32), h) / float(w)
    kpts = jnp.stack([cols, rows], axis=1)                            # (h*w, 2)
    enc = kenc_forward(params['kenc'], kpts)                          # (h*w, 448), computed once
    desc = desc.reshape(B, h * w, DESC_DIM) + enc[None]               # (B, N, 448)
    return desc, (h, w)


def log_optimal_transport(scores, alpha, scale, iters):
    # TODO(synk): the reference's customised log_optimal_transport takes a `scale` tensor whose
    # usage is not defined in the provided source; standard SuperGlue log-Sinkhorn is implemented.
    B, m, n = scores.shape
    bins0 = jnp.broadcast_to(alpha, (B, m, 1))
    bins1 = jnp.broadcast_to(alpha, (B, 1, n))
    alpha_c = jnp.broadcast_to(alpha, (B, 1, 1))
    couplings = jnp.concatenate(
        [jnp.concatenate([scores, bins0], axis=-1),
         jnp.concatenate([bins1, alpha_c], axis=-1)], axis=1)
    norm = -math.log(m + n)
    log_mu = jnp.concatenate([jnp.full((m,), norm), jnp.array([math.log(n) + norm])])
    log_nu = jnp.concatenate([jnp.full((n,), norm), jnp.array([math.log(m) + norm])])
    log_mu = jnp.broadcast_to(log_mu[None, :, None], (B, m + 1, 1)).astype(jnp.float32)
    log_nu = jnp.broadcast_to(log_nu[None, None, :], (B, 1, n + 1)).astype(jnp.float32)
    # final "- norm" shift is fused into the Sinkhorn kernel epilogue
    return _sinkhorn_pallas(couplings.astype(jnp.float32), log_mu, log_nu, iters, -norm)


def est_position(scores, scale_src, image_shape, patch_scale):
    H, W = image_shape
    B = scores.shape[0]
    _ = scale_src.reshape(B, -1, 1)
    max0 = jnp.argmax(scores, axis=2)[:, :-1]
    max1 = jnp.argmax(scores, axis=1)[:, :-1]
    n_bins = (H // patch_scale) * (W // patch_scale)
    if_nomatching1 = max0 == n_bins
    if_nomatching2 = max1 == n_bins
    # TODO(synk): Iterative_expand_matrix / Compute_positions_and_ranges are not defined in the
    # reference source; trust_score / pts / x_scale / y_scale are zero placeholders.
    trust_score = jnp.zeros((B, n_bins), jnp.float32)
    pts = jnp.zeros((B, n_bins, 2), jnp.float32)
    x_scale = jnp.zeros((B, n_bins), jnp.float32)
    y_scale = jnp.zeros((B, n_bins), jnp.float32)
    return trust_score, pts, x_scale, y_scale, if_nomatching1, if_nomatching2


# ----------------------------------------------------------------------------
# FirstLayer.forward
# ----------------------------------------------------------------------------

def first_layer_forward(params, left_ori, right_ori, if_local=False):
    mean = jnp.array([0.485, 0.456, 0.406], jnp.float32)
    inv_std = jnp.array([1.0 / 0.229, 1.0 / 0.224, 1.0 / 0.225], jnp.float32)
    # ImageNet normalization: trivially-fusible NHWC broadcast (no transposes, no extra kernel)
    left = (left_ori.astype(jnp.float32) - mean) * inv_std
    right = (right_ori.astype(jnp.float32) - mean) * inv_std
    B, H, W, _ = left.shape

    # Left and right are stacked on the batch axis for the whole descriptor pipeline.
    imgs = jnp.concatenate([left, right], axis=0)                     # (2B, H, W, 3)
    # TODO(synk): torchvision resize antialias behaviour is approximated with plain bilinear resize.
    imgs1 = jax.image.resize(imgs, (2 * B, H // 2, W // 2, 3), 'bilinear')
    imgs2 = jax.image.resize(imgs, (2 * B, H // 4, W // 4, 3), 'bilinear')

    desc, (h, w) = descriptor_branch(params, imgs, imgs1, imgs2)      # (2B, N, 448)
    desc0, desc1 = desc[:B], desc[B:]

    desc0, desc1 = gnn_forward(params['gnn'], desc0, desc1)

    mdesc = conv1d(jnp.concatenate([desc0, desc1], axis=0), *params['final_proj'])
    mdesc0, mdesc1 = mdesc[:B], mdesc[B:]                             # (B, N, 448)

    md1_img = mdesc1.reshape(B, h, w, DESC_DIM)
    scale = conv2d(md1_img, *params['scalex_proj'], stride=1, pad=1)  # (B, h, w, 1)
    scale = scale.reshape(B, 1, h * w)
    scale = jnp.exp(jax.nn.sigmoid(scale) * math.log(256.0) - math.log(256.0) / 2)

    # 0.1 / sqrt(448) scaling fused into the Pallas score kernel
    scores = pallas_pairwise_scores(mdesc0, mdesc1,
                                    scale=0.1 / (DESC_DIM ** 0.5))    # (B, N, N)
    scores = log_optimal_transport(scores, jnp.abs(params['bin_score']),
                                   scale, SINKHORN_ITERS)

    scales = jnp.sqrt(jnp.sum(jnp.exp(scores[:, :-1, :-1]), axis=1) + 1e-8)
    patch_scale = 32
    trust_score, pts, x_scale_reproj, y_scale_reproj, if1, if2 = est_position(
        scores, scales, (H, W), patch_scale)

    # TODO(synk): split_patches / Compute_imgs (patch-cropping output_list stage) are not defined
    # in the reference source; output_list is left empty and third_layer_set is None.
    output_list = []
    third_layer_set = None

    # features returned in the PyTorch (B, C, N) convention
    features = [jnp.transpose(mdesc0, (0, 2, 1)), jnp.transpose(mdesc1, (0, 2, 1))]

    return {'trust_score': trust_score,
            'scales_reproj': [x_scale_reproj, y_scale_reproj],
            'scores': scores,
            'features': features,
            'pts': pts,
            'if_nomatching1': if1,
            'if_nomatching2': if2,
            'output_list': output_list,
            'third_layer_set': third_layer_set}


if __name__ == "__main__":
    key = jax.random.PRNGKey(0)
    pkey, dkey = jax.random.split(key)
    params = init_params(pkey)

    B, H, W = 2, 64, 64            # small shapes: feature map 2x2 -> 4 keypoints per image
    k1, k2 = jax.random.split(dkey)
    left_ori = jax.random.uniform(k1, (B, H, W, 3), jnp.float32)
    right_ori = jax.random.uniform(k2, (B, H, W, 3), jnp.float32)

    out = first_layer_forward(params, left_ori, right_ori, if_local=False)
    jax.block_until_ready(out)
    assert jnp.isfinite(out['scores']).all()
    assert out['scores'].shape == (B, H // 32 * (W // 32) + 1, H // 32 * (W // 32) + 1)
    print("KERNEL_OK")
</pallas_src>

<mosaic_0001>
module attributes {stable_mosaic.version = 11 : i64} {
  func.func @_mm_kernel(%arg0: i32, %arg1: i32, %arg2: i32, %arg3: memref<256x152xbf16, #tpu.memory_space<vmem>>, %arg4: memref<152x128xbf16, #tpu.memory_space<vmem>>, %arg5: memref<1x128xf32, #tpu.memory_space<vmem>>, %arg6: memref<256x128xf32, #tpu.memory_space<vmem>>, %arg7: memref<256x128xf32, #tpu.memory_space<vmem>>) attributes {dimension_semantics = [#tpu.dimension_semantics<parallel>, #tpu.dimension_semantics<parallel>, #tpu.dimension_semantics<arbitrary>], iteration_bounds = array<i64: 16, 1, 1>, scalar_prefetch = 0 : i64, scratch_operands = 1 : i64, tpu.core_type = #tpu.core_type<tc>, window_params = [{transform_indices = @transform_0, window_bounds = array<i64: 256, 152>}, {transform_indices = @transform_1, window_bounds = array<i64: 152, 128>}, {transform_indices = @transform_2, window_bounds = array<i64: 1, 128>}, {transform_indices = @transform_3, window_bounds = array<i64: 256, 128>}]} {
    %c0_i32 = arith.constant 0 : i32
    %0 = arith.cmpi eq, %arg2, %c0_i32 : i32
    %1 = arith.extui %0 : i1 to i32
    %c0_i32_0 = arith.constant 0 : i32
    %2 = arith.cmpi ne, %1, %c0_i32_0 : i32
    scf.if %2 {
      %cst_10 = arith.constant 0.000000e+00 : f32
      %12 = vector.broadcast %cst_10 : f32 to vector<256x128xf32>
      %c0_11 = arith.constant 0 : index
      %c0_12 = arith.constant 0 : index
      %13 = vector.load %arg7[%c0_11, %c0_12] : memref<256x128xf32, #tpu.memory_space<vmem>>, vector<256x128xf32>
      tpu.vector_store %arg7[%c0_11, %c0_12], %12 {strides = array<i32>} : memref<256x128xf32, #tpu.memory_space<vmem>>, vector<256x128xf32>,
    } else {
    }
    %c0 = arith.constant 0 : index
    %c0_1 = arith.constant 0 : index
    %3 = vector.load %arg7[%c0, %c0_1] : memref<256x128xf32, #tpu.memory_space<vmem>>, vector<256x128xf32>
    %c0_2 = arith.constant 0 : index
    %c0_3 = arith.constant 0 : index
    %4 = vector.load %arg3[%c0_2, %c0_3] : memref<256x152xbf16, #tpu.memory_space<vmem>>, vector<256x152xbf16>
    %c0_4 = arith.constant 0 : index
    %c0_5 = arith.constant 0 : index
    %5 = vector.load %arg4[%c0_4, %c0_5] : memref<152x128xbf16, #tpu.memory_space<vmem>>, vector<152x128xbf16>
    %cst = arith.constant dense<0.000000e+00> : vector<256x128xf32>
    %6 = tpu.matmul %4, %5, %cst {dimension_numbers = #tpu.dot_dimension_numbers<[1], [0], [0], [1], [0, 0, 1, 1], [], []>} : vector<256x152xbf16>, vector<152x128xbf16>, vector<256x128xf32> -> vector<256x128xf32>
    %7 = arith.addf %3, %6 : vector<256x128xf32>
    %c0_6 = arith.constant 0 : index
    %c0_7 = arith.constant 0 : index
    %8 = vector.load %arg7[%c0_6, %c0_7] : memref<256x128xf32, #tpu.memory_space<vmem>>, vector<256x128xf32>
    tpu.vector_store %arg7[%c0_6, %c0_7], %7 {strides = array<i32>} : memref<256x128xf32, #tpu.memory_space<vmem>>, vector<256x128xf32>,
    %c0_i32_8 = arith.constant 0 : i32
    %9 = arith.cmpi eq, %arg2, %c0_i32_8 : i32
    %10 = arith.extui %9 : i1 to i32
    %c0_i32_9 = arith.constant 0 : i32
    %11 = arith.cmpi ne, %10, %c0_i32_9 : i32
    scf.if %11 {
      %c0_10 = arith.constant 0 : index
      %c0_11 = arith.constant 0 : index
      %12 = vector.load %arg7[%c0_10, %c0_11] : memref<256x128xf32, #tpu.memory_space<vmem>>, vector<256x128xf32>
      %c0_12 = arith.constant 0 : index
      %c0_13 = arith.constant 0 : index
      %13 = vector.load %arg5[%c0_12, %c0_13] : memref<1x128xf32, #tpu.memory_space<vmem>>, vector<1x128xf32>
      %14 = vector.broadcast %13 : vector<1x128xf32> to vector<256x128xf32>
      %15 = arith.addf %12, %14 : vector<256x128xf32>
      %cst_14 = arith.constant 0.000000e+00 : f32
      %16 = vector.broadcast %cst_14 : f32 to vector<256x128xf32>
      %17 = arith.maximumf %15, %16 : vector<256x128xf32>
      %c0_15 = arith.constant 0 : index
      %c0_16 = arith.constant 0 : index
      %18 = vector.load %arg6[%c0_15, %c0_16] : memref<256x128xf32, #tpu.memory_space<vmem>>, vector<256x128xf32>
      tpu.vector_store %arg6[%c0_15, %c0_16], %17 {strides = array<i32>} : memref<256x128xf32, #tpu.memory_space<vmem>>, vector<256x128xf32>,
    } else {
    }
    return
  }
  func.func @transform_0(%arg0: i32, %arg1: i32, %arg2: i32) -> (i32, i32) {
    %c0_i32 = arith.constant 0 : i32
    return %arg0, %arg2 : i32, i32
  }
  func.func @transform_1(%arg0: i32, %arg1: i32, %arg2: i32) -> (i32, i32) {
    %c0_i32 = arith.constant 0 : i32
    return %arg2, %arg1 : i32, i32
  }
  func.func @transform_2(%arg0: i32, %arg1: i32, %arg2: i32) -> (i32, i32) {
    %c0_i32 = arith.constant 0 : i32
    %c0_i32_0 = arith.constant 0 : i32
    return %c0_i32, %arg1 : i32, i32
  }
  func.func @transform_3(%arg0: i32, %arg1: i32, %arg2: i32) -> (i32, i32) {
    %c0_i32 = arith.constant 0 : i32
    return %arg0, %arg1 : i32, i32
  }
}

</mosaic_0001>

<bundles_post_ra>
// kernel: _matmul_impl.1
= control target key start
LH: loop header
LB: loop body
LE: loop exit
PB: predicated region body
PF: predicated region fallthrough
CT: control target
= control target key end

     0   :  { %s1340_s12 = smov 0   ;;  %s1342_s13 = smov 0   ;;  %s1531_s0 = inlined_call_operand.vmem [shape: bf16[4096,152], index: 0, kind: input, shape index: {}]   ;;  %s1532_s1 = inlined_call_operand.vmem [shape: bf16[152,128], index: 1, kind: input, shape index: {}]   ;;  %s1533_s2 = inlined_call_operand.vmem [shape: f32[1,128], index: 2, kind: input, shape index: {}]   ;;  %s1534_s3 = inlined_call_operand.vmem [shape: f32[4096,128], index: 3, kind: output, shape index: {}]  }
   0x1   :  { %s1344_s14 = smov 0  }
   0x2 LB: > { %s32_s15 = sadd.s32 1, %s1313_s13  ;;  %p1124_p0 = scmp.ge.s32.totalorder %s1317_s14, 1  ;;  %s1317_s14 = sphi %s1344_s14, %s13_s14   ;;  %s1313_s13 = sphi %s1342_s13, %s1536_s13   ;;  %s1309_s12 = sphi %s1340_s12, %s1535_s12  }
   0x3   : > { %p34_p1 = scmp.ge.s32.totalorder %s32_s15, 16  ;;  %p191_p2 = scmp.lt.s32.totalorder %s1317_s14, 17 }
   0x5   : > { %s1538_s15 = smov (%p34_p1, %s32_s15), 0  ;;  %p192_p3 = pnand %p1124_p0, %p191_p2 }
   0x6   : > { %v1237_v0 = vld [vmem:[%s1532_s1] sm:$0xff] (!%p192_p3)   ;;  %v1319_v1 = vmov (!%p192_p3), 0   ;;  %v1238_v2 = vld [vmem:[%s1532_s1 + $0x8] sm:$0xff] (!%p192_p3)   ;;  %s1125_s20 = sshll.u32 (!%p192_p3), %s1309_s12, 5  ;;  %v1239_v3 = vld [vmem:[%s1532_s1 + $0x10] sm:$0xff] (!%p192_p3)   ;;  %vm588_vm0 = vcmask (!%p192_p3), 195584  }
   0x7   : > { %195 = sbr.rel (%p192_p3) target bundleno = 322 (0x142), region = 32  ;;  %641 = vmatprep.subr.bf16.mxu0 (!%p192_p3), %v1319_v1  ;;  %1192 = vmatprep.subr.bf16.mxu1 (!%p192_p3), %v1319_v1  ;;  %p236_p4 = scmp.lt.s32.totalorder (!%p192_p3), %s1125_s20, 511  ;;  %v1240_v4 = vld [vmem:[%s1532_s1 + $0x18] sm:$0xff] (!%p192_p3)   ;;  %v1241_v7 = vld [vmem:[%s1532_s1 + $0x20] sm:$0xff] (!%p192_p3)   ;;  %v1242_v8 = vld [vmem:[%s1532_s1 + $0x28] sm:$0xff] (!%p192_p3)   ;;  %vm637_vm1 = vcmask (!%p192_p3), 1043456  }
   0x8   : > { %642 = vmatpush1.bf16.msra.mxu0 (!%p192_p3), %v1237_v0  ;;  %1202 = vmatpush1.bf16.msra.mxu1 (!%p192_p3), %v1237_v0  ;;  %v1243_v9 = vld [vmem:[%s1532_s1 + $0x30] sm:$0xff] (!%p192_p3)   ;;  %v1244_v10 = vld [vmem:[%s1532_s1 + $0x38] sm:$0xff] (!%p192_p3)   ;;  %v1245_v11 = vld [vmem:[%s1532_s1 + $0x40] sm:$0xff] (!%p192_p3)  }
   0x9   : > { %643 = vmatprep.subr.bf16.mxu0 (!%p192_p3), %v1319_v1  ;;  %1193 = vmatprep.subr.bf16.mxu1 (!%p192_p3), %v1319_v1  ;;  %v1246_v12 = vld [vmem:[%s1532_s1 + $0x48] ss:$0 sps:$4 sm:$0xff] (!%p192_p3)   ;;  %v1449_v44 = vld [vmem:[%s1533_s2] ss:$0 sm:$0xff] (!%p192_p3) }
   0xa   : > { %v639_v13 = vsel (!%p192_p3), %vm637_vm1, %v1246_v12, 0 }
   0xc   : > { %644 = vmatpush1.bf16.msra.mxu0 (!%p192_p3), %v1238_v2  ;;  %1203 = vmatpush1.bf16.msra.mxu1 (!%p192_p3), %v1238_v2 }
   0xd   : > { %645 = vmatprep.subr.bf16.mxu0 (!%p192_p3), %v1319_v1  ;;  %1194 = vmatprep.subr.bf16.mxu1 (!%p192_p3), %v1319_v1 }
   0xe   : > { %s1540_s20 = smov (!%p236_p4, %s1125_s20), 511 }
   0xf   : > { %s1191_s23 = sshll.u32 %s1540_s20, 3 }
  0x10   : > { %s1375_s26 = scalar_lea.vmem %s1531_s0, %s1191_s23  ;;  %646 = vmatpush1.bf16.msra.mxu0 %v1239_v3  ;;  %1204 = vmatpush1.bf16.msra.mxu1 %v1239_v3  ;;  %s1458_s22 = scalar_lea.vmem %s1534_s3, %s1191_s23 }
  0x11   : > { %v1249_v5 = vld [vmem:[%s1375_s26 + $0x4] ss:$8 sps:$4 sm:$0xff]   ;;  %647 = vmatprep.subr.bf16.mxu0 %v1319_v1  ;;  %1195 = vmatprep.subr.bf16.mxu1 %v1319_v1  ;;  %v1247_v14 = vld [vmem:[%s1375_s26] ss:$8 sps:$4 sm:$0xff]   ;;  %v1253_v16 = vld [vmem:[%s1375_s26 + $0x14] ss:$8 sps:$4 sm:$0xff]  }
  0x12   : > { %1172 = vmatprep.mubr.msk.bf16.mxu0 %vm588_vm0, %v1249_v5  ;;  %v1252_v6 = vld [vmem:[%s1375_s26 + $0x84] ss:$8 sps:$4 sm:$0xff]   ;;  %v1250_v15 = vld [vmem:[%s1375_s26 + $0x80] ss:$8 sps:$4 sm:$0xff]   ;;  %v1255_v17 = vld [vmem:[%s1375_s26 + $0x94] ss:$8 sps:$4 sm:$0xff]  }
  0x13   : > { %1180 = vmatprep.mubr.msk.bf16.mxu1 %vm588_vm0, %v1252_v6  ;;  %v1257_v18 = vld [vmem:[%s1375_s26 + $0x10] ss:$8 sps:$4 sm:$0xff]   ;;  %v1259_v20 = vld [vmem:[%s1375_s26 + $0x24] ss:$8 sps:$4 sm:$0xff]   ;;  %v1263_v22 = vld [vmem:[%s1375_s26 + $0x20] ss:$8 sps:$4 sm:$0xff]  }
  0x14   : > { %648 = vmatpush1.bf16.msra.mxu0 %v1240_v4  ;;  %1205 = vmatpush1.bf16.msra.mxu1 %v1240_v4  ;;  %v1258_v19 = vld [vmem:[%s1375_s26 + $0x90] ss:$8 sps:$4 sm:$0xff]   ;;  %v1261_v21 = vld [vmem:[%s1375_s26 + $0xa4] ss:$8 sps:$4 sm:$0xff]   ;;  %v1264_v23 = vld [vmem:[%s1375_s26 + $0xa0] ss:$8 sps:$4 sm:$0xff]  }
  0x15   : > { %649 = vmatprep.subr.bf16.mxu0 %v1319_v1  ;;  %1196 = vmatprep.subr.bf16.mxu1 %v1319_v1  ;;  %v1265_v24 = vld [vmem:[%s1375_s26 + $0x34] ss:$8 sps:$4 sm:$0xff]   ;;  %v1269_v26 = vld [vmem:[%s1375_s26 + $0x30] ss:$8 sps:$4 sm:$0xff]   ;;  %v1271_v28 = vld [vmem:[%s1375_s26 + $0x44] ss:$8 sps:$4 sm:$0xff]  }
  0x16   : > { %v1267_v25 = vld [vmem:[%s1375_s26 + $0xb4] ss:$8 sps:$4 sm:$0xff]   ;;  %v1270_v27 = vld [vmem:[%s1375_s26 + $0xb0] ss:$8 sps:$4 sm:$0xff]   ;;  %v1273_v29 = vld [vmem:[%s1375_s26 + $0xc4] ss:$8 sps:$4 sm:$0xff]  }
  0x17   : > { %v1275_v30 = vld [vmem:[%s1375_s26 + $0x40] ss:$8 sps:$4 sm:$0xff]   ;;  %v1277_v32 = vld [vmem:[%s1375_s26 + $0x54] ss:$8 sps:$4 sm:$0xff]   ;;  %v1281_v34 = vld [vmem:[%s1375_s26 + $0x50] ss:$8 sps:$4 sm:$0xff]  }
  0x18   : > { %650 = vmatpush1.bf16.msra.mxu0 %v1241_v7  ;;  %1206 = vmatpush1.bf16.msra.mxu1 %v1241_v7  ;;  %v1276_v31 = vld [vmem:[%s1375_s26 + $0xc0] ss:$8 sps:$4 sm:$0xff]   ;;  %v1279_v33 = vld [vmem:[%s1375_s26 + $0xd4] ss:$8 sps:$4 sm:$0xff]   ;;  %v1282_v35 = vld [vmem:[%s1375_s26 + $0xd0] ss:$8 sps:$4 sm:$0xff]  }
  0x19   : > { %651 = vmatprep.subr.bf16.mxu0 %v1319_v1  ;;  %1197 = vmatprep.subr.bf16.mxu1 %v1319_v1  ;;  %v1283_v36 = vld [vmem:[%s1375_s26 + $0x64] ss:$8 sps:$4 sm:$0xff]   ;;  %v1287_v38 = vld [vmem:[%s1375_s26 + $0x60] ss:$8 sps:$4 sm:$0xff]   ;;  %v1289_v40 = vld [vmem:[%s1375_s26 + $0x74] ss:$8 sps:$4 sm:$0xff]  }
  0x1a   : > { %v1285_v37 = vld [vmem:[%s1375_s26 + $0xe4] ss:$8 sps:$4 sm:$0xff]   ;;  %v1288_v39 = vld [vmem:[%s1375_s26 + $0xe0] ss:$8 sps:$4 sm:$0xff]   ;;  %v1291_v41 = vld [vmem:[%s1375_s26 + $0xf4] ss:$8 sps:$4 sm:$0xff]  }
  0x1b   : > { %v1293_v42 = vld [vmem:[%s1375_s26 + $0x70] ss:$8 sps:$4 sm:$0xff]  }
  0x1c   : > { %652 = vmatpush1.bf16.msra.mxu0 %v1242_v8  ;;  %1207 = vmatpush1.bf16.msra.mxu1 %v1242_v8  ;;  %v1294_v43 = vld [vmem:[%s1375_s26 + $0xf0] ss:$8 sps:$4 sm:$0xff]  }
  0x1d   : > { %653 = vmatprep.subr.bf16.mxu0 %v1319_v1  ;;  %1198 = vmatprep.subr.bf16.mxu1 %v1319_v1 }
  0x20   : > { %654 = vmatpush1.bf16.msra.mxu0 %v1243_v9  ;;  %1208 = vmatpush1.bf16.msra.mxu1 %v1243_v9 }
  0x21   : > { %655 = vmatprep.subr.bf16.mxu0 %v1319_v1  ;;  %1199 = vmatprep.subr.bf16.mxu1 %v1319_v1 }
  0x24   : > { %656 = vmatpush1.bf16.msra.mxu0 %v1244_v10  ;;  %1209 = vmatpush1.bf16.msra.mxu1 %v1244_v10 }
  0x25   : > { %657 = vmatprep.subr.bf16.mxu0 %v1319_v1  ;;  %1200 = vmatprep.subr.bf16.mxu1 %v1319_v1 }
  0x28   : > { %658 = vmatpush1.bf16.msra.mxu0 %v1245_v11  ;;  %1210 = vmatpush1.bf16.msra.mxu1 %v1245_v11 }
  0x29   : > { %659 = vmatprep.subr.bf16.mxu0 %v1319_v1  ;;  %1201 = vmatprep.subr.bf16.mxu1 %v1319_v1 }
  0x2c   : > { %660 = vmatpush1.bf16.msra.mxu0 %v639_v13  ;;  %1211 = vmatpush1.bf16.msra.mxu1 %v639_v13 }
  0x2f   : > { %674 = vmatmul.mubr.bf16.vlgmr.msra.gmra.mrb[0].mxu0 %v1247_v14  ;;  %738 = vmatmul.mubr.bf16.vlgmr.msra.gmra.mrb[0].mxu1 %v1250_v15 }
  0x30   : > { %1173 = vmatprep.mubr.msk.bf16.mxu0 %vm588_vm0, %v1253_v16  ;;  %1181 = vmatprep.mubr.msk.bf16.mxu1 %vm588_vm0, %v1255_v17 }
  0x37   : > { %682 = vmatmul.mubr.bf16.gmra.mrb[4].mxu0 %v1257_v18  ;;  %746 = vmatmul.mubr.bf16.gmra.mrb[4].mxu1 %v1258_v19 }
  0x38   : > { %1174 = vmatprep.mubr.msk.bf16.mxu0 %vm588_vm0, %v1259_v20  ;;  %1182 = vmatprep.mubr.msk.bf16.mxu1 %vm588_vm0, %v1261_v21 }
  0x3f   : > { %690 = vmatmul.mubr.bf16.gmra.mrb[8].mxu0 %v1263_v22  ;;  %754 = vmatmul.mubr.bf16.gmra.mrb[8].mxu1 %v1264_v23 }
  0x40   : > { %1175 = vmatprep.mubr.msk.bf16.mxu0 %vm588_vm0, %v1265_v24  ;;  %1183 = vmatprep.mubr.msk.bf16.mxu1 %vm588_vm0, %v1267_v25 }
  0x47   : > { %698 = vmatmul.mubr.bf16.gmra.mrb[12].mxu0 %v1269_v26  ;;  %762 = vmatmul.mubr.bf16.gmra.mrb[12].mxu1 %v1270_v27 }
  0x48   : > { %1176 = vmatprep.mubr.msk.bf16.mxu0 %vm588_vm0, %v1271_v28  ;;  %1184 = vmatprep.mubr.msk.bf16.mxu1 %vm588_vm0, %v1273_v29 }
  0x4f   : > { %706 = vmatmul.mubr.bf16.gmra.mrb[16].mxu0 %v1275_v30  ;;  %770 = vmatmul.mubr.bf16.gmra.mrb[16].mxu1 %v1276_v31 }
  0x50   : > { %1177 = vmatprep.mubr.msk.bf16.mxu0 %vm588_vm0, %v1277_v32  ;;  %1185 = vmatprep.mubr.msk.bf16.mxu1 %vm588_vm0, %v1279_v33 }
  0x57   : > { %714 = vmatmul.mubr.bf16.gmra.mrb[20].mxu0 %v1281_v34  ;;  %778 = vmatmul.mubr.bf16.gmra.mrb[20].mxu1 %v1282_v35 }
  0x58   : > { %1178 = vmatprep.mubr.msk.bf16.mxu0 %vm588_vm0, %v1283_v36  ;;  %1186 = vmatprep.mubr.msk.bf16.mxu1 %vm588_vm0, %v1285_v37 }
  0x5f   : > { %722 = vmatmul.mubr.bf16.gmra.mrb[24].mxu0 %v1287_v38  ;;  %786 = vmatmul.mubr.bf16.gmra.mrb[24].mxu1 %v1288_v39 }
  0x60   : > { %1179 = vmatprep.mubr.msk.bf16.mxu0 %vm588_vm0, %v1289_v40  ;;  %1187 = vmatprep.mubr.msk.bf16.mxu1 %vm588_vm0, %v1291_v41 }
  0x67   : > { %730 = vmatmul.mubr.bf16.gmra.mrb[28].mxu0 %v1293_v42  ;;  %794 = vmatmul.mubr.bf16.gmra.mrb[28].mxu1 %v1294_v43 }
 0x102   : > { %v675_v45 = vpop.f32.mrb[0].mxu0  ;;  %v739_v46 = vpop.f32.mrb[0].mxu1 }
 0x103   : > { %v908_v47 = vadd.f32 %v1449_v44, %v675_v45  ;;  %v924_v48 = vadd.f32 %v1449_v44, %v739_v46  ;;  %v677_v49 = vpop.f32.mrb[1].mxu0  ;;  %v741_v50 = vpop.f32.mrb[1].mxu1 }
 0x104   : > { %v678_v51 = vpop.f32.mrb[2].mxu0  ;;  %v742_v52 = vpop.f32.mrb[2].mxu1 }
 0x105   : > { %v940_v53 = vmax.f32 %v908_v47, 0.0  ;;  %v956_v54 = vmax.f32 %v924_v48, 0.0  ;;  %v909_v55 = vadd.f32 %v1449_v44, %v678_v51  ;;  %v925_v56 = vadd.f32 %v1449_v44, %v742_v52  ;;  %v680_v57 = vpop.f32.mrb[3].mxu0  ;;  %v744_v58 = vpop.f32.mrb[3].mxu1 }
 0x107   : > { %972 = vst [vmem:[%s1458_s22] sm:$0xff] %v940_v53  ;;  %988 = vst [vmem:[%s1458_s22 + $0x80] sm:$0xff] %v956_v54  ;;  %v941_v59 = vmax.f32 %v909_v55, 0.0  ;;  %v957_v60 = vmax.f32 %v925_v56, 0.0 }
 0x109   : > { %973 = vst [vmem:[%s1458_s22 + $0x8] sm:$0xff] %v941_v59  ;;  %989 = vst [vmem:[%s1458_s22 + $0x88] sm:$0xff] %v957_v60 }
 0x10a   : > { %v683_v61 = vpop.f32.mrb[4].mxu0  ;;  %v747_v62 = vpop.f32.mrb[4].mxu1 }
 0x10b   : > { %v910_v63 = vadd.f32 %v1449_v44, %v683_v61  ;;  %v926_v0 = vadd.f32 %v1449_v44, %v747_v62  ;;  %v685_v1 = vpop.f32.mrb[5].mxu0  ;;  %v749_v2 = vpop.f32.mrb[5].mxu1 }
 0x10c   : > { %v686_v3 = vpop.f32.mrb[6].mxu0  ;;  %v750_v4 = vpop.f32.mrb[6].mxu1 }
 0x10d   : > { %v942_v5 = vmax.f32 %v910_v63, 0.0  ;;  %v958_v6 = vmax.f32 %v926_v0, 0.0  ;;  %v911_v7 = vadd.f32 %v1449_v44, %v686_v3  ;;  %v927_v8 = vadd.f32 %v1449_v44, %v750_v4  ;;  %v688_v9 = vpop.f32.mrb[7].mxu0  ;;  %v752_v10 = vpop.f32.mrb[7].mxu1 }
 0x10f   : > { %974 = vst [vmem:[%s1458_s22 + $0x10] sm:$0xff] %v942_v5  ;;  %990 = vst [vmem:[%s1458_s22 + $0x90] sm:$0xff] %v958_v6  ;;  %v943_v11 = vmax.f32 %v911_v7, 0.0  ;;  %v959_v12 = vmax.f32 %v927_v8, 0.0 }
 0x111   : > { %975 = vst [vmem:[%s1458_s22 + $0x18] sm:$0xff] %v943_v11  ;;  %991 = vst [vmem:[%s1458_s22 + $0x98] sm:$0xff] %v959_v12 }
 0x112   : > { %v691_v13 = vpop.f32.mrb[8].mxu0  ;;  %v755_v14 = vpop.f32.mrb[8].mxu1 }
 0x113   : > { %v912_v15 = vadd.f32 %v1449_v44, %v691_v13  ;;  %v928_v16 = vadd.f32 %v1449_v44, %v755_v14  ;;  %v693_v17 = vpop.f32.mrb[9].mxu0  ;;  %v757_v18 = vpop.f32.mrb[9].mxu1 }
 0x114   : > { %v694_v19 = vpop.f32.mrb[10].mxu0  ;;  %v758_v20 = vpop.f32.mrb[10].mxu1 }
 0x115   : > { %v944_v21 = vmax.f32 %v912_v15, 0.0  ;;  %v960_v22 = vmax.f32 %v928_v16, 0.0  ;;  %v913_v23 = vadd.f32 %v1449_v44, %v694_v19  ;;  %v929_v24 = vadd.f32 %v1449_v44, %v758_v20  ;;  %v696_v25 = vpop.f32.mrb[11].mxu0  ;;  %v760_v26 = vpop.f32.mrb[11].mxu1 }
 0x117   : > { %976 = vst [vmem:[%s1458_s22 + $0x20] sm:$0xff] %v944_v21  ;;  %992 = vst [vmem:[%s1458_s22 + $0xa0] sm:$0xff] %v960_v22  ;;  %v945_v27 = vmax.f32 %v913_v23, 0.0  ;;  %v961_v28 = vmax.f32 %v929_v24, 0.0 }
 0x119   : > { %977 = vst [vmem:[%s1458_s22 + $0x28] sm:$0xff] %v945_v27  ;;  %993 = vst [vmem:[%s1458_s22 + $0xa8] sm:$0xff] %v961_v28 }
 0x11a   : > { %v699_v29 = vpop.f32.mrb[12].mxu0  ;;  %v763_v30 = vpop.f32.mrb[12].mxu1 }
 0x11b   : > { %v914_v31 = vadd.f32 %v1449_v44, %v699_v29  ;;  %v930_v32 = vadd.f32 %v1449_v44, %v763_v30  ;;  %v701_v33 = vpop.f32.mrb[13].mxu0  ;;  %v765_v34 = vpop.f32.mrb[13].mxu1 }
 0x11c   : > { %v702_v35 = vpop.f32.mrb[14].mxu0  ;;  %v766_v36 = vpop.f32.mrb[14].mxu1 }
 0x11d   : > { %v946_v37 = vmax.f32 %v914_v31, 0.0  ;;  %v962_v38 = vmax.f32 %v930_v32, 0.0  ;;  %v915_v39 = vadd.f32 %v1449_v44, %v702_v35  ;;  %v931_v40 = vadd.f32 %v1449_v44, %v766_v36  ;;  %v704_v41 = vpop.f32.mrb[15].mxu0  ;;  %v768_v42 = vpop.f32.mrb[15].mxu1 }
 0x11f   : > { %978 = vst [vmem:[%s1458_s22 + $0x30] sm:$0xff] %v946_v37  ;;  %994 = vst [vmem:[%s1458_s22 + $0xb0] sm:$0xff] %v962_v38  ;;  %v947_v43 = vmax.f32 %v915_v39, 0.0  ;;  %v963_v45 = vmax.f32 %v931_v40, 0.0 }
 0x121   : > { %979 = vst [vmem:[%s1458_s22 + $0x38] sm:$0xff] %v947_v43  ;;  %995 = vst [vmem:[%s1458_s22 + $0xb8] sm:$0xff] %v963_v45 }
 0x122   : > { %v707_v46 = vpop.f32.mrb[16].mxu0  ;;  %v771_v47 = vpop.f32.mrb[16].mxu1 }
 0x123   : > { %v916_v48 = vadd.f32 %v1449_v44, %v707_v46  ;;  %v932_v49 = vadd.f32 %v1449_v44, %v771_v47  ;;  %v709_v50 = vpop.f32.mrb[17].mxu0  ;;  %v773_v51 = vpop.f32.mrb[17].mxu1 }
 0x124   : > { %v710_v52 = vpop.f32.mrb[18].mxu0  ;;  %v774_v53 = vpop.f32.mrb[18].mxu1 }
 0x125   : > { %v948_v54 = vmax.f32 %v916_v48, 0.0  ;;  %v964_v55 = vmax.f32 %v932_v49, 0.0  ;;  %v917_v56 = vadd.f32 %v1449_v44, %v710_v52  ;;  %v933_v57 = vadd.f32 %v1449_v44, %v774_v53  ;;  %v712_v58 = vpop.f32.mrb[19].mxu0  ;;  %v776_v59 = vpop.f32.mrb[19].mxu1 }
 0x127   : > { %980 = vst [vmem:[%s1458_s22 + $0x40] sm:$0xff] %v948_v54  ;;  %996 = vst [vmem:[%s1458_s22 + $0xc0] sm:$0xff] %v964_v55  ;;  %v949_v60 = vmax.f32 %v917_v56, 0.0  ;;  %v965_v61 = vmax.f32 %v933_v57, 0.0 }
 0x129   : > { %981 = vst [vmem:[%s1458_s22 + $0x48] sm:$0xff] %v949_v60  ;;  %997 = vst [vmem:[%s1458_s22 + $0xc8] sm:$0xff] %v965_v61 }
 0x12a   : > { %v715_v62 = vpop.f32.mrb[20].mxu0  ;;  %v779_v63 = vpop.f32.mrb[20].mxu1 }
 0x12b   : > { %v918_v0 = vadd.f32 %v1449_v44, %v715_v62  ;;  %v934_v1 = vadd.f32 %v1449_v44, %v779_v63  ;;  %v717_v2 = vpop.f32.mrb[21].mxu0  ;;  %v781_v3 = vpop.f32.mrb[21].mxu1 }
 0x12c   : > { %v718_v4 = vpop.f32.mrb[22].mxu0  ;;  %v782_v5 = vpop.f32.mrb[22].mxu1 }
 0x12d   : > { %v950_v6 = vmax.f32 %v918_v0, 0.0  ;;  %v966_v7 = vmax.f32 %v934_v1, 0.0  ;;  %v919_v8 = vadd.f32 %v1449_v44, %v718_v4  ;;  %v935_v9 = vadd.f32 %v1449_v44, %v782_v5  ;;  %v720_v10 = vpop.f32.mrb[23].mxu0  ;;  %v784_v11 = vpop.f32.mrb[23].mxu1 }
 0x12f   : > { %982 = vst [vmem:[%s1458_s22 + $0x50] sm:$0xff] %v950_v6  ;;  %998 = vst [vmem:[%s1458_s22 + $0xd0] sm:$0xff] %v966_v7  ;;  %v951_v12 = vmax.f32 %v919_v8, 0.0  ;;  %v967_v13 = vmax.f32 %v935_v9, 0.0 }
 0x131   : > { %983 = vst [vmem:[%s1458_s22 + $0x58] sm:$0xff] %v951_v12  ;;  %999 = vst [vmem:[%s1458_s22 + $0xd8] sm:$0xff] %v967_v13 }
 0x132   : > { %v723_v14 = vpop.f32.mrb[24].mxu0  ;;  %v787_v15 = vpop.f32.mrb[24].mxu1 }
 0x133   : > { %v920_v16 = vadd.f32 %v1449_v44, %v723_v14  ;;  %v936_v17 = vadd.f32 %v1449_v44, %v787_v15  ;;  %v725_v18 = vpop.f32.mrb[25].mxu0  ;;  %v789_v19 = vpop.f32.mrb[25].mxu1 }
 0x134   : > { %v726_v20 = vpop.f32.mrb[26].mxu0  ;;  %v790_v21 = vpop.f32.mrb[26].mxu1 }
 0x135   : > { %v952_v22 = vmax.f32 %v920_v16, 0.0  ;;  %v968_v23 = vmax.f32 %v936_v17, 0.0  ;;  %v921_v24 = vadd.f32 %v1449_v44, %v726_v20  ;;  %v937_v25 = vadd.f32 %v1449_v44, %v790_v21  ;;  %v728_v26 = vpop.f32.mrb[27].mxu0  ;;  %v792_v27 = vpop.f32.mrb[27].mxu1 }
 0x137   : > { %984 = vst [vmem:[%s1458_s22 + $0x60] sm:$0xff] %v952_v22  ;;  %1000 = vst [vmem:[%s1458_s22 + $0xe0] sm:$0xff] %v968_v23  ;;  %v953_v28 = vmax.f32 %v921_v24, 0.0  ;;  %v969_v29 = vmax.f32 %v937_v25, 0.0 }
 0x139   : > { %985 = vst [vmem:[%s1458_s22 + $0x68] sm:$0xff] %v953_v28  ;;  %1001 = vst [vmem:[%s1458_s22 + $0xe8] sm:$0xff] %v969_v29 }
 0x13a   : > { %v731_v30 = vpop.f32.mrb[28].mxu0  ;;  %v795_v31 = vpop.f32.mrb[28].mxu1 }
 0x13b   : > { %v922_v32 = vadd.f32 %v1449_v44, %v731_v30  ;;  %v938_v33 = vadd.f32 %v1449_v44, %v795_v31  ;;  %v733_v34 = vpop.f32.mrb[29].mxu0  ;;  %v797_v35 = vpop.f32.mrb[29].mxu1 }
 0x13c   : > { %v734_v36 = vpop.f32.mrb[30].mxu0  ;;  %v798_v37 = vpop.f32.mrb[30].mxu1 }
 0x13d   : > { %v954_v38 = vmax.f32 %v922_v32, 0.0  ;;  %v970_v39 = vmax.f32 %v938_v33, 0.0  ;;  %v923_v40 = vadd.f32 %v1449_v44, %v734_v36  ;;  %v939_v41 = vadd.f32 %v1449_v44, %v798_v37  ;;  %v736_v42 = vpop.f32.mrb[31].mxu0  ;;  %v800_v43 = vpop.f32.mrb[31].mxu1 }
 0x13f   : > { %986 = vst [vmem:[%s1458_s22 + $0x70] sm:$0xff] %v954_v38  ;;  %1002 = vst [vmem:[%s1458_s22 + $0xf0] sm:$0xff] %v970_v39  ;;  %v955_v45 = vmax.f32 %v923_v40, 0.0  ;;  %v971_v46 = vmax.f32 %v939_v41, 0.0 }
 0x141   : > { %987 = vst [vmem:[%s1458_s22 + $0x78] sm:$0xff] %v955_v45  ;;  %1003 = vst [vmem:[%s1458_s22 + $0xf8] sm:$0xff] %v971_v46 }
 0x142 PF: > { %s13_s14 = sadd.s32 1, %s1317_s14   ;;  %s1535_s12 = smov %s1313_s13 }
 0x143   : > { %p10_p5 = scmp.ge.s32.totalorder %s13_s14, 18   ;;  %s1536_s13 = smov %s1538_s15 }
 0x145   :  { %12 = sbr.rel (!%p10_p5) target bundleno = 2 (0x2), region = 76 }

</bundles_post_ra>
